<compile_context>
chip_gen: v7x
topology: tpu7x:2x2x1
jax: 0.10.0
libtpu: 0.0.40
codegen_flags: <defaults>
</compile_context>

<pallas_src>
import functools

import jax
import jax.numpy as jnp
from jax.experimental import pallas as pl
from jax.experimental.pallas import tpu as pltpu


def _bert_embeddings_kernel(ids_ref,                     # SMEM (B, S) int32
                            tt_ref,                      # VMEM (1, ts, 1) int32
                            wtab_ref,                    # HBM  (V, H) f32 (pl.ANY)
                            ptab_ref,                    # VMEM (ts, H) f32
                            ttab_ref,                    # VMEM (Tpad, H) f32
                            gamma_ref, beta_ref,         # VMEM (1, H) f32
                            out_ref,                     # VMEM (1, ts, H) f32
                            gbuf,                        # VMEM scratch (ts, H)
                            gsem,                        # DMA semaphore
                            *, eps, seq_tile, num_types):
    b = pl.program_id(0)
    s = pl.program_id(1)
    base = s * seq_tile

    # ---- word-embedding gather: one row-DMA per token, HBM -> VMEM scratch --
    @pl.loop(0, seq_tile)
    def _start(i):
        row = ids_ref[b, base + i]
        pltpu.make_async_copy(wtab_ref.at[pl.ds(row, 1), :],
                              gbuf.at[pl.ds(i, 1), :],
                              gsem).start()

    @pl.loop(0, seq_tile)
    def _wait(i):
        # Placeholder source index: only the transfer size / semaphore matter.
        pltpu.make_async_copy(wtab_ref.at[pl.ds(0, 1), :],
                              gbuf.at[pl.ds(i, 1), :],
                              gsem).wait()

    words = gbuf[...].astype(jnp.float32)          # (ts, H)
    pos = ptab_ref[...].astype(jnp.float32)        # (ts, H)

    # ---- token-type embedding via VPU select (T is tiny, typically 2) -------
    tts = tt_ref[0, :, :]                          # (ts, 1) int32
    ttype = jnp.zeros_like(words)
    for t in range(num_types):                     # static, small
        sel = (tts == t).astype(jnp.float32)       # (ts, 1)
        ttype = ttype + sel * ttab_ref[t, :].astype(jnp.float32)

    x = words + pos + ttype                        # (ts, H)

    # ---- LayerNorm: y = gamma * (x - mean) / sqrt(var + eps) + beta ---------
    mean = jnp.mean(x, axis=-1, keepdims=True)
    cent = x - mean
    var = jnp.mean(cent * cent, axis=-1, keepdims=True)
    y = cent * jax.lax.rsqrt(var + eps)
    y = y * gamma_ref[...] + beta_ref[...]

    # Dropout: identity at inference time (no-op).
    out_ref[0, :, :] = y.astype(out_ref.dtype)


def bert_embeddings(input_ids, token_type_ids, word_table, pos_table,
                    type_table, gamma, beta, *, eps=1e-12, seq_tile=None):
    B, S = input_ids.shape
    V, H = word_table.shape
    P = pos_table.shape[0]
    T = type_table.shape[0]
    assert S <= P, "sequence length exceeds max_position_embeddings"

    if seq_tile is None:
        seq_tile = min(S, 256)
    ts = seq_tile
    assert S % ts == 0 and ts % 8 == 0, "seq_tile must divide S and be a multiple of 8"

    # Pad the tiny token-type table up to 8 rows (sublane multiple); padding
    # rows are never selected by the in-kernel select loop (which runs over T).
    Tpad = max(8, T)
    type_table_p = jnp.zeros((Tpad, H), type_table.dtype).at[:T].set(type_table)

    ids = input_ids.astype(jnp.int32)                      # (B, S) -> SMEM prefetch
    tts3 = token_type_ids.astype(jnp.int32)[..., None]     # (B, S, 1) -> VMEM
    gamma2 = gamma.reshape(1, H)
    beta2 = beta.reshape(1, H)

    grid = (B, S // ts)

    grid_spec = pltpu.PrefetchScalarGridSpec(
        num_scalar_prefetch=1,                             # input_ids in SMEM
        grid=grid,
        in_specs=[
            pl.BlockSpec((1, ts, 1), lambda b, s, ids: (b, s, 0)),   # token_type_ids
            pl.BlockSpec(memory_space=pl.ANY),                       # word table (HBM)
            pl.BlockSpec((ts, H), lambda b, s, ids: (s, 0)),         # position rows
            pl.BlockSpec((Tpad, H), lambda b, s, ids: (0, 0)),       # type table
            pl.BlockSpec((1, H), lambda b, s, ids: (0, 0)),          # gamma
            pl.BlockSpec((1, H), lambda b, s, ids: (0, 0)),          # beta
        ],
        out_specs=pl.BlockSpec((1, ts, H), lambda b, s, ids: (b, s, 0)),
        scratch_shapes=[
            pltpu.VMEM((ts, H), word_table.dtype),                   # gather buffer
            pltpu.SemaphoreType.DMA,                                 # gather semaphore
        ],
    )

    # Explicit scoped-VMEM budget: resident tiles + double buffering + scratch,
    # with headroom; stays well under v7x's 64 MiB physical VMEM.
    vmem_limit = int(min(48 * 1024 * 1024,
                         max(16 * 1024 * 1024, 10 * ts * H * 4)))

    return pl.pallas_call(
        functools.partial(_bert_embeddings_kernel, eps=eps,
                          seq_tile=ts, num_types=T),
        out_shape=jax.ShapeDtypeStruct((B, S, H), jnp.float32),
        grid_spec=grid_spec,
        compiler_params=pltpu.CompilerParams(
            dimension_semantics=("parallel", "parallel"),
            vmem_limit_bytes=vmem_limit),
    )(ids, tts3, word_table, pos_table, type_table_p, gamma2, beta2)


def bert_embeddings_ref(input_ids, token_type_ids, word_table, pos_table,
                        type_table, gamma, beta, eps=1e-12):
    """Pure-JAX reference of the PyTorch forward (eval mode)."""
    B, S = input_ids.shape
    we = word_table[input_ids]
    pe = pos_table[jnp.arange(S)][None, :, :]
    te = type_table[token_type_ids]
    x = we + pe + te
    u = jnp.mean(x, axis=-1, keepdims=True)
    s = jnp.mean((x - u) ** 2, axis=-1, keepdims=True)
    xn = (x - u) / jnp.sqrt(s + eps)
    return xn * gamma + beta


if __name__ == "__main__":
    # Small synthetic BERT config.
    vocab_size = 64
    hidden_size = 128
    max_position_embeddings = 16
    type_vocab_size = 2
    layer_norm_eps = 1e-12
    B, S = 2, 16
    seq_tile = 8   # exercises the per-tile position index_map (grid = (2, 2))

    key = jax.random.PRNGKey(0)
    k_w, k_p, k_t, k_ids, k_tt = jax.random.split(key, 5)

    word_table = 0.02 * jax.random.normal(k_w, (vocab_size, hidden_size),
                                          dtype=jnp.float32)
    word_table = word_table.at[0].set(0.0)  # padding_idx=0
    pos_table = 0.02 * jax.random.normal(k_p, (max_position_embeddings, hidden_size),
                                         dtype=jnp.float32)
    type_table = 0.02 * jax.random.normal(k_t, (type_vocab_size, hidden_size),
                                          dtype=jnp.float32)
    gamma = jnp.ones((hidden_size,), jnp.float32)
    beta = jnp.zeros((hidden_size,), jnp.float32)

    input_ids = jax.random.randint(k_ids, (B, S), 0, vocab_size, dtype=jnp.int32)
    token_type_ids = jax.random.randint(k_tt, (B, S), 0, type_vocab_size,
                                        dtype=jnp.int32)

    out = bert_embeddings(input_ids, token_type_ids, word_table, pos_table,
                          type_table, gamma, beta, eps=layer_norm_eps,
                          seq_tile=seq_tile)
    out = jax.block_until_ready(out)

    ref = bert_embeddings_ref(input_ids, token_type_ids, word_table, pos_table,
                              type_table, gamma, beta, eps=layer_norm_eps)
    assert out.shape == (B, S, hidden_size)
    assert jnp.allclose(out, ref, atol=1e-5, rtol=1e-5), "mismatch vs reference"

    print("KERNEL_OK")
</pallas_src>

<mosaic_0001>
module attributes {stable_mosaic.version = 11 : i64} {
  func.func @_bert_embeddings_kernel(%arg0: i32, %arg1: i32, %arg2: memref<2x16xi32, #tpu.memory_space<smem>>, %arg3: memref<1x8x1xi32, #tpu.memory_space<vmem>>, %arg4: memref<64x128xf32, #tpu.memory_space<any>>, %arg5: memref<8x128xf32, #tpu.memory_space<vmem>>, %arg6: memref<8x128xf32, #tpu.memory_space<vmem>>, %arg7: memref<1x128xf32, #tpu.memory_space<vmem>>, %arg8: memref<1x128xf32, #tpu.memory_space<vmem>>, %arg9: memref<1x8x128xf32, #tpu.memory_space<vmem>>, %arg10: memref<8x128xf32, #tpu.memory_space<vmem>>, %arg11: memref<!tpu.dma_semaphore, #tpu.memory_space<semaphore_mem>>) attributes {dimension_semantics = [#tpu.dimension_semantics<parallel>, #tpu.dimension_semantics<parallel>], iteration_bounds = array<i64: 2, 2>, scalar_prefetch = 1 : i64, scratch_operands = 2 : i64, tpu.core_type = #tpu.core_type<tc>, window_params = [{transform_indices = @transform_0, window_bounds = array<i64: 1, 8, 1>}, {}, {transform_indices = @transform_2, window_bounds = array<i64: 8, 128>}, {pipeline_mode = #tpu.pipeline_mode<synchronous>, transform_indices = @transform_3, window_bounds = array<i64: 8, 128>}, {pipeline_mode = #tpu.pipeline_mode<synchronous>, transform_indices = @transform_4, window_bounds = array<i64: 1, 128>}, {pipeline_mode = #tpu.pipeline_mode<synchronous>, transform_indices = @transform_5, window_bounds = array<i64: 1, 128>}, {transform_indices = @transform_6, window_bounds = array<i64: 1, 8, 128>}]} {
    %c8_i32 = arith.constant 8 : i32
    %0 = arith.muli %arg1, %c8_i32 : i32
    %c0_i32 = arith.constant 0 : i32
    %c8_i32_0 = arith.constant 8 : i32
    %1 = arith.addi %c0_i32, %c8_i32_0 : i32
    %c1_i32 = arith.constant 1 : i32
    scf.for %arg12 = %c0_i32 to %1 step %c1_i32  : i32 {
      %c1_i32_29 = arith.constant 1 : i32
      %57 = arith.muli %arg12, %c1_i32_29 : i32
      %c0_i32_30 = arith.constant 0 : i32
      %58 = arith.addi %c0_i32_30, %57 : i32
      %59 = arith.addi %0, %58 : i32
      %60 = arith.index_cast %arg0 : i32 to index
      %61 = arith.index_cast %59 : i32 to index
      %62 = memref.load %arg2[%60, %61] : memref<2x16xi32, #tpu.memory_space<smem>>
      %c0_i32_31 = arith.constant 0 : i32
      %63 = tpu.memref_slice %arg4[%62, %c0_i32_31] : memref<64x128xf32, #tpu.memory_space<any>> -> memref<1x128xf32, #tpu.memory_space<any>>
      %c0_i32_32 = arith.constant 0 : i32
      %64 = tpu.memref_slice %arg10[%58, %c0_i32_32] : memref<8x128xf32, #tpu.memory_space<vmem>> -> memref<1x128xf32, #tpu.memory_space<vmem>>
      tpu.enqueue_dma source(%63 : memref<1x128xf32, #tpu.memory_space<any>>) target(%64 : memref<1x128xf32, #tpu.memory_space<vmem>>) target_semaphore(%arg11 : memref<!tpu.dma_semaphore, #tpu.memory_space<semaphore_mem>>)
    }
    %c8_i32_1 = arith.constant 8 : i32
    %c0_i32_2 = arith.constant 0 : i32
    %c8_i32_3 = arith.constant 8 : i32
    %2 = arith.addi %c0_i32_2, %c8_i32_3 : i32
    %c1_i32_4 = arith.constant 1 : i32
    scf.for %arg12 = %c0_i32_2 to %2 step %c1_i32_4  : i32 {
      %c1_i32_29 = arith.constant 1 : i32
      %57 = arith.muli %arg12, %c1_i32_29 : i32
      %c0_i32_30 = arith.constant 0 : i32
      %58 = arith.addi %c0_i32_30, %57 : i32
      %c0_i32_31 = arith.constant 0 : i32
      %c0_i32_32 = arith.constant 0 : i32
      %59 = tpu.memref_slice %arg4[%c0_i32_31, %c0_i32_32] : memref<64x128xf32, #tpu.memory_space<any>> -> memref<1x128xf32, #tpu.memory_space<any>>
      %c0_i32_33 = arith.constant 0 : i32
      %60 = tpu.memref_slice %arg10[%58, %c0_i32_33] : memref<8x128xf32, #tpu.memory_space<vmem>> -> memref<1x128xf32, #tpu.memory_space<vmem>>
      tpu.wait_dma2 semaphore(%arg11 : memref<!tpu.dma_semaphore, #tpu.memory_space<semaphore_mem>>) src(%59 : memref<1x128xf32, #tpu.memory_space<any>>) dst(%60 : memref<1x128xf32, #tpu.memory_space<vmem>>)
    }
    %c8_i32_5 = arith.constant 8 : i32
    %c0 = arith.constant 0 : index
    %c0_6 = arith.constant 0 : index
    %3 = vector.load %arg10[%c0, %c0_6] : memref<8x128xf32, #tpu.memory_space<vmem>>, vector<8x128xf32>
    %c0_7 = arith.constant 0 : index
    %c0_8 = arith.constant 0 : index
    %4 = vector.load %arg5[%c0_7, %c0_8] : memref<8x128xf32, #tpu.memory_space<vmem>>, vector<8x128xf32>
    %c0_9 = arith.constant 0 : index
    %c0_10 = arith.constant 0 : index
    %c0_11 = arith.constant 0 : index
    %5 = vector.load %arg3[%c0_9, %c0_10, %c0_11] : memref<1x8x1xi32, #tpu.memory_space<vmem>>, vector<1x8x1xi32>
    %6 = vector.shape_cast %5 : vector<1x8x1xi32> to vector<8x1xi32>
    %cst = arith.constant 0.000000e+00 : f32
    %7 = vector.broadcast %cst : f32 to vector<8x128xf32>
    %c0_i32_12 = arith.constant 0 : i32
    %8 = vector.broadcast %c0_i32_12 : i32 to vector<8x1xi32>
    %9 = arith.cmpi eq, %6, %8 : vector<8x1xi32>
    %10 = arith.extui %9 : vector<8x1xi1> to vector<8x1xi32>
    %11 = arith.sitofp %10 : vector<8x1xi32> to vector<8x1xf32>
    %c0_13 = arith.constant 0 : index
    %c0_14 = arith.constant 0 : index
    %12 = vector.load %arg6[%c0_13, %c0_14] : memref<8x128xf32, #tpu.memory_space<vmem>>, vector<1x128xf32>
    %13 = vector.shape_cast %12 : vector<1x128xf32> to vector<128xf32>
    %14 = vector.shape_cast %13 : vector<128xf32> to vector<1x128xf32>
    %15 = vector.broadcast %11 : vector<8x1xf32> to vector<8x128xf32>
    %16 = vector.broadcast %14 : vector<1x128xf32> to vector<8x128xf32>
    %17 = arith.mulf %15, %16 : vector<8x128xf32>
    %18 = arith.addf %7, %17 : vector<8x128xf32>
    %c1_i32_15 = arith.constant 1 : i32
    %19 = vector.broadcast %c1_i32_15 : i32 to vector<8x1xi32>
    %20 = arith.cmpi eq, %6, %19 : vector<8x1xi32>
    %21 = arith.extui %20 : vector<8x1xi1> to vector<8x1xi32>
    %22 = arith.sitofp %21 : vector<8x1xi32> to vector<8x1xf32>
    %c1 = arith.constant 1 : index
    %c0_16 = arith.constant 0 : index
    %23 = vector.load %arg6[%c1, %c0_16] : memref<8x128xf32, #tpu.memory_space<vmem>>, vector<1x128xf32>
    %24 = vector.shape_cast %23 : vector<1x128xf32> to vector<128xf32>
    %25 = vector.shape_cast %24 : vector<128xf32> to vector<1x128xf32>
    %26 = vector.broadcast %22 : vector<8x1xf32> to vector<8x128xf32>
    %27 = vector.broadcast %25 : vector<1x128xf32> to vector<8x128xf32>
    %28 = arith.mulf %26, %27 : vector<8x128xf32>
    %29 = arith.addf %18, %28 : vector<8x128xf32>
    %30 = arith.addf %3, %4 : vector<8x128xf32>
    %31 = arith.addf %30, %29 : vector<8x128xf32>
    %cst_17 = arith.constant dense<0.000000e+00> : vector<8xf32>
    %32 = vector.multi_reduction <add>, %31, %cst_17 [1] : vector<8x128xf32> to vector<8xf32>
    %33 = vector.shape_cast %32 : vector<8xf32> to vector<8x1xf32>
    %cst_18 = arith.constant 1.280000e+02 : f32
    %34 = vector.broadcast %cst_18 : f32 to vector<8x1xf32>
    %35 = arith.divf %33, %34 : vector<8x1xf32>
    %36 = vector.broadcast %35 : vector<8x1xf32> to vector<8x128xf32>
    %37 = arith.subf %31, %36 : vector<8x128xf32>
    %38 = arith.mulf %37, %37 : vector<8x128xf32>
    %cst_19 = arith.constant dense<0.000000e+00> : vector<8xf32>
    %39 = vector.multi_reduction <add>, %38, %cst_19 [1] : vector<8x128xf32> to vector<8xf32>
    %40 = vector.shape_cast %39 : vector<8xf32> to vector<8x1xf32>
    %cst_20 = arith.constant 1.280000e+02 : f32
    %41 = vector.broadcast %cst_20 : f32 to vector<8x1xf32>
    %42 = arith.divf %40, %41 : vector<8x1xf32>
    %cst_21 = arith.constant 9.99999996E-13 : f32
    %43 = vector.broadcast %cst_21 : f32 to vector<8x1xf32>
    %44 = arith.addf %42, %43 : vector<8x1xf32>
    %45 = math.rsqrt %44 : vector<8x1xf32>
    %46 = vector.broadcast %45 : vector<8x1xf32> to vector<8x128xf32>
    %47 = arith.mulf %37, %46 : vector<8x128xf32>
    %c0_22 = arith.constant 0 : index
    %c0_23 = arith.constant 0 : index
    %48 = vector.load %arg7[%c0_22, %c0_23] : memref<1x128xf32, #tpu.memory_space<vmem>>, vector<1x128xf32>
    %49 = vector.broadcast %48 : vector<1x128xf32> to vector<8x128xf32>
    %50 = arith.mulf %47, %49 : vector<8x128xf32>
    %c0_24 = arith.constant 0 : index
    %c0_25 = arith.constant 0 : index
    %51 = vector.load %arg8[%c0_24, %c0_25] : memref<1x128xf32, #tpu.memory_space<vmem>>, vector<1x128xf32>
    %52 = vector.broadcast %51 : vector<1x128xf32> to vector<8x128xf32>
    %53 = arith.addf %50, %52 : vector<8x128xf32>
    %c0_26 = arith.constant 0 : index
    %c0_27 = arith.constant 0 : index
    %c0_28 = arith.constant 0 : index
    %54 = vector.load %arg9[%c0_26, %c0_27, %c0_28] : memref<1x8x128xf32, #tpu.memory_space<vmem>>, vector<1x8x128xf32>
    %55 = vector.shape_cast %54 : vector<1x8x128xf32> to vector<8x128xf32>
    %56 = vector.shape_cast %53 : vector<8x128xf32> to vector<1x8x128xf32>
    tpu.vector_store %arg9[%c0_26, %c0_27, %c0_28], %56 {strides = array<i32>} : memref<1x8x128xf32, #tpu.memory_space<vmem>>, vector<1x8x128xf32>,
    return
  }
  func.func @transform_0(%arg0: i32, %arg1: i32, %arg2: memref<2x16xi32, #tpu.memory_space<smem>>) -> (i32, i32, i32) {
    %c0_i32 = arith.constant 0 : i32
    %c0_i32_0 = arith.constant 0 : i32
    return %arg0, %arg1, %c0_i32 : i32, i32, i32
  }
  func.func @transform_2(%arg0: i32, %arg1: i32, %arg2: memref<2x16xi32, #tpu.memory_space<smem>>) -> (i32, i32) {
    %c0_i32 = arith.constant 0 : i32
    %c0_i32_0 = arith.constant 0 : i32
    return %arg1, %c0_i32 : i32, i32
  }
  func.func @transform_3(%arg0: i32, %arg1: i32, %arg2: memref<2x16xi32, #tpu.memory_space<smem>>) -> (i32, i32) {
    %c0_i32 = arith.constant 0 : i32
    %c0_i32_0 = arith.constant 0 : i32
    %c0_i32_1 = arith.constant 0 : i32
    return %c0_i32, %c0_i32_0 : i32, i32
  }
  func.func @transform_4(%arg0: i32, %arg1: i32, %arg2: memref<2x16xi32, #tpu.memory_space<smem>>) -> (i32, i32) {
    %c0_i32 = arith.constant 0 : i32
    %c0_i32_0 = arith.constant 0 : i32
    %c0_i32_1 = arith.constant 0 : i32
    return %c0_i32, %c0_i32_0 : i32, i32
  }
  func.func @transform_5(%arg0: i32, %arg1: i32, %arg2: memref<2x16xi32, #tpu.memory_space<smem>>) -> (i32, i32) {
    %c0_i32 = arith.constant 0 : i32
    %c0_i32_0 = arith.constant 0 : i32
    %c0_i32_1 = arith.constant 0 : i32
    return %c0_i32, %c0_i32_0 : i32, i32
  }
  func.func @transform_6(%arg0: i32, %arg1: i32, %arg2: memref<2x16xi32, #tpu.memory_space<smem>>) -> (i32, i32, i32) {
    %c0_i32 = arith.constant 0 : i32
    %c0_i32_0 = arith.constant 0 : i32
    return %arg0, %arg1, %c0_i32 : i32, i32, i32
  }
}

</mosaic_0001>

<bundles_post_ra>
// kernel: tpu_custom_call.1
= control target key start
LH: loop header
LB: loop body
LE: loop exit
PB: predicated region body
PF: predicated region fallthrough
CT: control target
= control target key end

     0   :  { %s1015_s0 = inlined_call_operand.vmem [shape: s32[2,16], index: 0, kind: input, shape index: {}]   ;;  %s1016_s1 = inlined_call_operand.vmem [shape: s32[2,16,1], index: 1, kind: input, shape index: {}]   ;;  %s1017_s2 = inlined_call_operand.hbm [shape: f32[64,128], index: 2, kind: input, shape index: {}]   ;;  %s1018_s3 = inlined_call_operand.vmem [shape: f32[16,128], index: 3, kind: input, shape index: {}]   ;;  %s1019_s4 = inlined_call_operand.vmem [shape: f32[8,128], index: 4, kind: input, shape index: {}]   ;;  %s1020_s5 = inlined_call_operand.vmem [shape: f32[1,128], index: 5, kind: input, shape index: {}]   ;;  %s1021_s6 = inlined_call_operand.vmem [shape: f32[1,128], index: 6, kind: input, shape index: {}]   ;;  %s1022_s7 = inlined_call_operand.hbm [shape: f32[2,16,128], index: 7, kind: output, shape index: {}]  }
   0x1   :  { %1033 = sst [smem:[#allocation24_spill]] %s1016_s1  ;;  %s12_s26 = sshll.u32 %s1015_s0, 4  ;;  %s13_s26 = int_to_ptr.vmem [resolvable:$true] %s12_s26 }
   0x2   :  { %1034 = sst [smem:[#allocation25_spill]] %s1018_s3  ;;  %s623_s27 = scalar_lea.vmem %s13_s26, 32 }
   0x3   :  { %p624_p0 = scmp.ne.s32.totalorder %s13_s26, %s623_s27  ;;  %p628_p1 = scmp.lt.s32.totalorder %s13_s26, %s13_s26 }
   0x4   :  { %p629_p2 = scmp.lt.s32.totalorder %s623_s27, %s623_s27 }
   0x6   :  { %p630_p3 = por %p629_p2, %p628_p1 }
   0x8   :  { %p631_p4 = pnand %p630_p3, %p624_p0 }
   0xa   :  { %634 = shalt.err (!%p631_p4)  }
   0xb   :  { %s775_s28 = smov [#allocation5]  }
   0xc   :  { %15 = dma.vmem_to_smem %s13_s26, 32, %s775_s28, [#allocation4] }
   0xd   :  { %727 = dma.done.wait [#allocation4], 32 }
   0xe   :  { %728 = vsyncadd [#allocation4], 4294967264 }
   0xf   :  { %17 = sfence }
  0x10   :  { %18 = vsyncpa [#allocation7], 0 }
  0x11   :  { %20 = vsyncpa [#allocation7 + $0x1], 0  ;;  %s823_s29 = smov 0   ;;  %s825_s30 = smov 0  }
  0x12   :  { %s827_s0 = smov 0   ;;  %s829_s8 = smov 0  }
  0x13   :  { %s831_s9 = smov 0   ;;  %s833_s10 = smov 0  }
  0x14   :  { %s835_s11 = smov 0   ;;  %s837_s12 = smov 0  }
  0x15 LB: > { %1035 = sst [smem:[#allocation15_spill]] %s737_s29  ;;  %s501_s13 = sadd.s32 4294967295, %s765_s12   ;;  %s765_s12 = sphi %s837_s12, %s26_s12   ;;  %s761_s11 = sphi %s835_s11, %s1061_s11   ;;  %s757_s10 = sphi %s833_s10, %s1060_s10   ;;  %s753_s9 = sphi %s831_s9, %s1059_s9   ;;  %s749_s8 = sphi %s829_s8, %s1058_s8   ;;  %s745_s0 = sphi %s827_s0, %s1057_s0   ;;  %s741_s30 = sphi %s825_s30, %s1063_s30   ;;  %s737_s29 = sphi %s823_s29, %s1062_s29  }
  0x16   : > { %1036 = sst [smem:[#allocation16_spill]] %s745_s0  ;;  %s502_s14 = sadd.s32 4294967294, %s765_s12  }
  0x17   : > { %1037 = sst [smem:[#allocation17_spill]] %s757_s10  ;;  %s35_s15 = sadd.s32 1, %s757_s10 }
  0x18   : > { %1038 = sst [smem:[#allocation18_spill]] %s761_s11  ;;  %p36_p5 = scmp.ge.s32.totalorder %s35_s15, 2 }
  0x19   : > { %1039 = sst [smem:[#allocation19_spill]] %s765_s12  ;;  %s38_s16 = sadd.s32 1, %s761_s11 }
  0x1a   : > { %p174_p6 = scmp.ne.s32.totalorder %s745_s0, %s741_s30  ;;  %p175_p7 = scmp.eq.s32.totalorder %s501_s13, 3 }
  0x1b   : > { %s1065_s15 = smov (%p36_p5, %s35_s15), 0  ;;  %s1067_s16 = smov (!%p36_p5, %s38_s16), %s761_s11 }
  0x1c   : > { %1040 = sst [smem:[#allocation20_spill]] %s1065_s15  ;;  %s160_s17 = ssub.s32 %s757_s10, %s1065_s15 }
  0x1d   : > { %p874_p8 = por %p175_p7, %p174_p6  ;;  %p40_p9 = scmp.ge.s32.totalorder %s1067_s16, 2 }
  0x1e   : > { %p180_p10 = scmp.ne.s32.totalorder %s741_s30, %s737_s29  ;;  %p181_p11 = scmp.eq.s32.totalorder %s502_s14, 3 }
  0x1f   : > { %p505_p12 = scmp.ge.s32.totalorder %s765_s12, 1  ;;  %s1069_s16 = smov (%p40_p9, %s1067_s16), 0 }
  0x20   : > { %1042 = sst [smem:[#allocation21_spill]] %s1069_s16  ;;  %p883_p13 = por %p181_p11, %p180_p10 }
  0x21   : > { %p226_p0 = scmp.lt.s32.totalorder %s765_s12, 5  ;;  %s159_s20 = ssub.s32 %s761_s11, %s1069_s16 }
  0x22   : > { %s1043_s19 = scalar_select %p883_p13, 1, 0 }
  0x23   : > { %s164_s21 = sadd.s32 1, %s745_s0  ;;  %s161_s22 = sor.u32 %s160_s17, %s159_s20 }
  0x24   : > { %1044 = sst [smem:[#allocation22_spill]] %s1043_s19  ;;  %p227_p1 = pnand %p505_p12, %p226_p0 }
  0x25   : > { %p162_p2 = scmp.eq.s32.totalorder %s161_s22, 0  ;;  %s1027_s24 = sand.u32 (!%p227_p1), 1, %s741_s30  }
  0x26   : > { %230 = sbr.rel (%p227_p1) target bundleno = 565 (0x235), region = 40  ;;  %p261_p3 = scmp.lt.s32.totalorder (!%p227_p1), %s753_s9, 1 }
  0x27   : > { %s892_s23 = scalar_select %p162_p2, %s745_s0, %s164_s21  }
  0x28   : > { %s898_s25 = sshll.u32 (!%p227_p1), %s1027_s24, 3  ;;  %p263_p4 = scmp.lt.s32.totalorder (!%p227_p1), %s749_s8, 1 }
  0x29   : > { %1045 = sst [smem:[#allocation23_spill]] %s892_s23  ;;  %s1046_s3 = sld [smem:[#allocation25_spill]] (!%p227_p1) }
  0x2a   : > { %s1047_s1 = sld [smem:[#allocation24_spill]] (!%p227_p1)  ;;  %s915_s23 = smov (!%p227_p1), 0  }
  0x2d   : > { %s262_s27 = scalar_select %p261_p3, %s753_s9, 1 }
  0x2e   : > { %s264_s28 = scalar_select %p263_p4, %s749_s8, 1 }
  0x2f   : > { %s507_s13 = sshll.u32 %s262_s27, 1 }
  0x30   : > { %s266_s14 = sadd.s32 %s507_s13, %s264_s28  ;;  %s509_s17 = sshll.u32 %s264_s28, 3 }
  0x31   : > { %s508_s20 = sshll.u32 %s266_s14, 3  ;;  %s907_s16 = scalar_lea.vmem %s1046_s3, %s509_s17 }
  0x32   : > { %s912_s10 = scalar_lea.vmem %s1047_s1, %s508_s20 }
  0x33 LB: >> { %s1048_s26 = sshll.u32 %s749_s8, 3  ;;  %s291_s20 = scalar_lea.vmem [#allocation2], %s769_s23  ;;  %s769_s23 = sphi %s915_s23, %s279_s23  }
  0x34   : >> { %s280_s27 = sadd.s32 %s769_s23, %s1048_s26  ;;  %s299_s21 = sshll.u32 %s291_s20, 4  ;;  %s300_s21 = int_to_ptr.vmem [resolvable:$true] %s299_s21 }
  0x35   : >> { %s281_s28 = sshra.s32 %s280_s27, 7  ;;  %s286_s13 = sand.u32 127, %s280_s27 }
  0x36   : >> { %s283_s14 = sadd.s32 %s753_s9, %s281_s28  ;;  %s637_s26 = scalar_lea.hbm %s1017_s2, 1024 }
  0x37   : >> { %s511_s11 = sshll.u32 %s283_s14, 7 }
  0x38   : >> { %s287_s15 = sadd.s32 %s511_s11, %s286_s13 }
  0x39   : >> { %s288_s17 = sld [smem:[#allocation5 + %s287_s15]] }
  0x3f   : >> { %s512_s22 = sshll.u32 %s288_s17, 4 }
  0x40   : >> { %s290_s3 = scalar_lea.hbm %s1017_s2, %s512_s22 }
  0x41   : >> { %s635_s0 = scalar_lea.hbm %s290_s3, 16  ;;  %p638_p6 = scmp.lt.u32.totalorder %s290_s3, %s1017_s2 }
  0x42   : >> { %p636_p5 = scmp.ne.s32.totalorder %s290_s3, %s635_s0  ;;  %p639_p7 = scmp.lt.u32.totalorder %s637_s26, %s635_s0 }
  0x43   : >> { %p641_p10 = scmp.lt.u32.totalorder %s635_s0, %s290_s3 }
  0x44   : >> { %p640_p9 = por %p639_p7, %p638_p6 }
  0x46   : >> { %p642_p11 = por %p641_p10, %p640_p9 }
  0x48   : >> { %p643_p12 = pnand %p642_p11, %p636_p5 }
  0x4a   : >> { %646 = shalt.err (!%p643_p12)  }
  0x4b   : >> { %s647_s28 = scalar_lea.vmem %s300_s21, 16  ;;  %s776_s1 = smov [#allocation2]  }
  0x4c   : >> { %p648_p0 = scmp.ne.s32.totalorder %s300_s21, %s647_s28  ;;  %s649_s24 = sshll.u32 %s776_s1, 4  ;;  %s650_s24 = int_to_ptr.vmem [resolvable:$false] %s649_s24 }
  0x4d   : >> { %s651_s13 = scalar_lea.vmem %s650_s24, 128  ;;  %p652_p1 = scmp.lt.s32.totalorder %s300_s21, %s650_s24 }
  0x4e   : >> { %p653_p2 = scmp.lt.s32.totalorder %s651_s13, %s647_s28 }
  0x50   : >> { %p654_p3 = por %p653_p2, %p652_p1 }
  0x52   : >> { %p655_p4 = pnand %p654_p3, %p648_p0 }
  0x54   : >> { %658 = shalt.err (!%p655_p4)  }
  0x55   : >> { %302 = dma.hbm_to_vmem [thread:$0]  %s290_s3, 16, %s300_s21, [#allocation3] }
  0x56   : >> { %s279_s23 = sadd.s32 1, %s769_s23  }
  0x57   : >> { %p276_p13 = scmp.ge.s32.totalorder %s279_s23, 8  }
  0x58   : > { %s771_s29 = smov (%p276_p13), 0  }
  0x59   : > { %278 = sbr.rel (!%p276_p13) target bundleno = 51 (0x33), region = 98 }
  0x60 LB: >> { %729 = dma.done.wait [#allocation3], 16  ;;  %s773_s29 = sphi %s771_s29, %s308_s29  }
  0x61   : >> { %730 = vsyncadd [#allocation3], 4294967280  ;;  %s308_s29 = sadd.s32 1, %s773_s29  }
  0x62   : >> { %p305_p5 = scmp.ge.s32.totalorder %s308_s29, 8  }
  0x63   : > { %v314_v0 = vld [vmem:[%s912_s10] sm:$0xff] (%p305_p5)  ;;  %v777_v1 = vmov (%p305_p5), 0   ;;  %v778_v2 = vmov (%p305_p5), 0.0   ;;  %s520_s10 = sshll.u32 (%p305_p5), %s753_s9, 1  ;;  %s1049_s17 = scalar_lea.vmem (%p305_p5), [#allocation6], %s898_s25 }
  0x64   : > { %307 = sbr.rel (!%p305_p5) target bundleno = 96 (0x60), region = 109  ;;  %615 = vset.pattern.permute.xlu0 (%p305_p5), %v777_v1  ;;  %vm315_vm0 = vcmp.eq.s32.totalorder (%p305_p5), %v314_v0, 0  ;;  %vm330_vm1 = vcmp.eq.s32.totalorder (%p305_p5), %v314_v0, 1  ;;  %v514_v6 = vld [vmem:[%s1019_s4] ss:$0 sm:$0xff] (%p305_p5)  ;;  %s392_s20 = sshll.u32 (%p305_p5), %s1049_s17, 4  ;;  %s960_s20 = int_to_ptr.vmem [resolvable:$true] %s392_s20 }
  0x65   : > { %v513_v3 = vsel (%p305_p5), %vm315_vm0, 1.0, %v778_v2  ;;  %v515_v4 = vsel (%p305_p5), %vm330_vm1, 1.0, %v778_v2  ;;  %v516_v7 = vld [vmem:[%s1019_s4 + $0x1] ss:$0 sm:$0xff] (%p305_p5)  ;;  %v517_v26 = vld [vmem:[%s1020_s5] ss:$0 sm:$0xff] (%p305_p5) }
  0x66   : > { %v616_v5 = vpack.i.bf16 (%p305_p5), %v515_v4, %v513_v3  ;;  %v312_v9 = vld [vmem:[#allocation2] sm:$0xff] (%p305_p5)  ;;  %s1051_s27 = sand.u32 (%p305_p5), 1, %s741_s30   ;;  %s659_s1 = scalar_lea.vmem (%p305_p5), %s960_s20, 128 }
  0x67   : > { %v313_v10 = vld [vmem:[%s907_s16] sm:$0xff] (%p305_p5)  ;;  %s388_s16 = sadd.s32 (%p305_p5), %s749_s8, %s520_s10  ;;  %s1050_s8 = smov (%p305_p5), %s1049_s17 }
  0x68   : > { %617 = vperm.xlu0 (%p305_p5), %615, %v616_v5   ;;  %v345_v15 = vadd.f32 (%p305_p5), %v313_v10, %v312_v9  ;;  %v518_v28 = vld [vmem:[%s1021_s6] ss:$0 sm:$0xff] (%p305_p5)  ;;  %s521_s15 = sshll.u32 (%p305_p5), %s388_s16, 7  ;;  %s377_s28 = scalar_lea.sflag (%p305_p5), [#allocation7], %s1051_s27 }
  0x69   : > { %s958_s9 = scalar_lea.hbm (%p305_p5), %s1022_s7, %s521_s15  ;;  %p660_p13 = scmp.ne.s32.totalorder (%p305_p5), %s960_s20, %s659_s1 }
  0x6a   : > { %s779_s24 = smov (%p305_p5), [#allocation6]  }
  0x6b   : > { %p661_p6 = pnand %p660_p13, %p874_p8  ;;  %s663_s13 = sshll.u32 %s779_s24, 4  ;;  %s664_s13 = int_to_ptr.vmem [resolvable:$false] %s663_s13 }
  0x6c   : > { %s665_s29 = scalar_lea.vmem %s664_s13, 256  ;;  %p666_p9 = scmp.lt.s32.totalorder %s960_s20, %s664_s13 }
  0x6d   : > { %p662_p7 = pneg %p661_p6  ;;  %p667_p10 = scmp.lt.s32.totalorder %s665_s29, %s659_s1 }
  0x6f   : > { %p668_p11 = por %p667_p10, %p666_p9 }
  0x71   : > { %p669_p12 = pnand %p668_p11, %p662_p7 }
  0xe7   : > { %v618_v8 = vpop.permute.xlu0 %617 }
  0xe8   : > { %v620_v11 = vunpack.i.h.bf16 %v618_v8  ;;  %v619_v12 = vunpack.i.l.bf16 %v618_v8 }
  0xea   : > { %v343_v13 = vmul.f32 %v620_v11, %v516_v7  ;;  %v328_v14 = vmul.f32 %v619_v12, %v514_v6 }
  0xec   : > { %v344_v16 = vadd.f32 %v343_v13, %v328_v14 }
  0xee   : > { %v346_v17 = vadd.f32 %v345_v15, %v344_v16 }
  0xf0   : > { %347 = vadd.xlane.f32.xlu0 %v346_v17 }
 0x17d   : > { %v348_v18 = vpop.xlane.xlu0 %347 }
 0x17e   : > { %v350_v19 = vmul.f32 0.0078125, %v348_v18 }
 0x180   : > { %v351_v20 = vsub.f32 %v346_v17, %v350_v19 }
 0x182   : > { %v352_v21 = vmul.f32 %v351_v20, %v351_v20 }
 0x184   : > { %353 = vadd.xlane.f32.xlu1 %v352_v21 }
 0x211   : > { %v354_v22 = vpop.xlane.xlu1 %353 }
 0x212   : > { %v355_v23 = vmul.f32 0.0078125, %v354_v22 }
 0x214   : > { %v356_v24 = vadd.f32 1e-12, %v355_v23 }
 0x216   : > { %621 = vrsqrt.f32 %v356_v24 }
 0x220   : > { %v622_v25 = vpop.eup %621 }
 0x221   : > { %v358_v27 = vmul.f32 %v622_v25, %v351_v20 }
 0x223   : > { %v366_v29 = vmul.f32 %v517_v26, %v358_v27 }
 0x225   : > { %v374_v30 = vadd.f32 %v518_v28, %v366_v29 }
 0x227   : > { %375 = vst [vmem:[%s1050_s8] sm:$0xff] %v374_v30 }
 0x228   : > { %672 = shalt.err (!%p669_p12)
}
 0x229   : > { %s673_s25 = scalar_lea.hbm %s958_s9, 128  ;;  %s677_s12 = scalar_lea.hbm %s1022_s7, 512 }
 0x22a   : > { %p674_p0 = scmp.ne.s32.totalorder %s958_s9, %s673_s25  ;;  %p678_p3 = scmp.lt.u32.totalorder %s958_s9, %s1022_s7 }
 0x22b   : > { %p679_p4 = scmp.lt.u32.totalorder %s677_s12, %s673_s25  ;;  %p681_p13 = scmp.lt.u32.totalorder %s673_s25, %s958_s9 }
 0x22c   : > { %p675_p1 = pnand %p674_p0, %p874_p8 }
 0x22d   : > { %p680_p5 = por %p679_p4, %p678_p3 }
 0x22e   : > { %p676_p2 = pneg %p675_p1 }
 0x22f   : > { %p682_p6 = por %p681_p13, %p680_p5 }
 0x231   : > { %p683_p7 = pnand %p682_p6, %p676_p2 }
 0x233   : > { %686 = shalt.err (!%p683_p7)
}
 0x234   : > { %525 = dma.vmem_to_hbm [thread:$0]  (%p874_p8), %s960_s20, 128, %s958_s9, %s377_s28  }
 0x235 PF: > { %s1052_s16 = sld [smem:[#allocation19_spill]]  ;;  %s1053_s23 = sld [smem:[#allocation15_spill]] }
 0x236   : > { %s1054_s26 = sld [smem:[#allocation22_spill]] }
 0x23b   : > { %p531_p9 = scmp.ge.s32.totalorder %s1052_s16, 2  ;;  %s404_s14 = sand.u32 1, %s1053_s23  }
 0x23c   : > { %p1055_p10 = scmp.ne.s32.totalorder %s1054_s26, 0  ;;  %s405_s11 = scalar_lea.sflag [#allocation7], %s404_s14 }
 0x23e   : > { %p528_p11 = pnand %p531_p9, %p1055_p10 }
 0x240   : > { %732 = dma.done.wait (!%p528_p11), %s405_s11, 128  }
 0x241   : > { %734 = vsyncadd (!%p528_p11), %s405_s11, 4294967168  ;;  %s26_s12 = sadd.s32 1, %s1052_s16   ;;  %s1056_s15 = sld [smem:[#allocation16_spill]] }
 0x242   : > { %p23_p12 = scmp.ge.s32.totalorder %s26_s12, 6   ;;  %s1057_s0 = sld [smem:[#allocation23_spill]] }
 0x243   : > { %s1058_s8 = sld [smem:[#allocation17_spill]]  ;;  %s1059_s9 = sld [smem:[#allocation18_spill]] }
 0x244   : > { %s1060_s10 = sld [smem:[#allocation20_spill]]  ;;  %s1061_s11 = sld [smem:[#allocation21_spill]] }
 0x245   : > { %s1062_s29 = smov %s741_s30  ;;  %25 = sbr.rel (!%p23_p12) target bundleno = 21 (0x15), region = 120 }
 0x247   : > { %s1063_s30 = smov %s1056_s15 }
 0x24c   :  { %410 = vsyncpa [#allocation7], 1 }
 0x24d   :  { %412 = vsyncpa [#allocation7 + $0x1], 1 }
 0x24e   :  { %413 = vsyncmov [#allocation3] }
 0x251   :  { %s414_s18 = vpop.sfrf %413 }
 0x252   :  { %p524_p8 = scmp.ne.s32.totalorder %s414_s18, 0 }
 0x254   :  { %418 = shalt.err (%p524_p8)  }

</bundles_post_ra>
